<compile_context>
chip_gen: v6e
topology: v6e:2x2x1
jax: 0.10.0
libtpu: 0.0.40
codegen_flags: <defaults>
</compile_context>

<pallas_src>
import functools
import math

import jax
import jax.numpy as jnp
import numpy as np
from jax.experimental import pallas as pl
from jax.experimental.pallas import tpu as pltpu


@functools.lru_cache(maxsize=None)
def _adaptive_pool_matrix_t(in_channels: int, out_channels: int) -> np.ndarray:
    """P^T[o, c] = 1/len(bin_o) if c in bin_o else 0 (adaptive_avg_pool1d bins)."""
    pt = np.zeros((out_channels, in_channels), dtype=np.float32)
    for o in range(out_channels):
        start = (o * in_channels) // out_channels                  # floor
        end = -((-(o + 1) * in_channels) // out_channels)          # ceil
        pt[o, start:end] = 1.0 / (end - start)
    return pt


def _pool_kernel(x_ref, pt_ref, o_ref):
    # x_ref : (1, C, thw)    pt_ref : (out_C, C)    o_ref : (1, out_C, thw)
    # One MXU matmul per (batch, spatial-tile):  [out_C, C] @ [C, thw].
    y = jnp.dot(pt_ref[...], x_ref[0], preferred_element_type=jnp.float32)
    o_ref[0] = y.astype(o_ref.dtype)


def channel_pooler(x: jax.Array, out_channels: int = 384) -> jax.Array:
    """x: [B, C, H, W] -> [B, out_channels, H, W] (NCHW in, NCHW out, no transposes)."""
    B, C, H, W = x.shape
    HW = H * W

    # Constant bin-averaging matrix (cached per (C, out_C)), transposed so the
    # contraction dim is C.  bf16 inputs get a bf16 matrix (native MXU fast
    # path, f32 accumulation); f32 inputs keep an exact f32 matrix.
    mat_dtype = x.dtype if x.dtype == jnp.bfloat16 else jnp.float32
    pool_mat_t = jnp.asarray(_adaptive_pool_matrix_t(C, out_channels), dtype=mat_dtype)

    dbytes = np.dtype(x.dtype).itemsize
    mbytes = np.dtype(mat_dtype).itemsize

    # Spatial tile (lane dim): largest multiple of 128 whose double-buffered
    # input+output blocks plus the grid-invariant P^T stay well inside the most
    # conservative scoped-VMEM budget (v5e default 16 MiB -> ~12 MiB budget),
    # capped at 2048 lanes (~6 MiB of output buffers at out_C=384 f32), which
    # also leaves headroom on v7x's smaller 64 MiB total VMEM.
    budget = 12 * 1024 * 1024
    fixed = 2 * out_channels * C * mbytes
    per_col = 2 * (C + out_channels) * dbytes
    thw_cap = max(128, min(2048, ((budget - fixed) // per_col // 128) * 128))

    if HW <= thw_cap:
        thw = HW          # full spatial extent in one block (allowed: full dim)
    else:
        thw = thw_cap     # multiple of 128; partial last tile is masked on store
    n_hw = pl.cdiv(HW, thw)

    x3 = x.reshape(B, C, HW)   # free reshape (no data movement)

    cost = pl.CostEstimate(
        flops=2 * B * HW * C * out_channels,
        transcendentals=0,
        bytes_accessed=dbytes * B * HW * (C + out_channels)
        + mbytes * C * out_channels,
    )

    y3 = pl.pallas_call(
        _pool_kernel,
        out_shape=jax.ShapeDtypeStruct((B, out_channels, HW), x.dtype),
        grid_spec=pltpu.PrefetchScalarGridSpec(
            num_scalar_prefetch=0,
            grid=(B, n_hw),
            in_specs=[
                pl.BlockSpec((1, C, thw), lambda b, j: (b, 0, j)),
                # Grid-invariant operand: constant block index -> not re-DMA'd.
                pl.BlockSpec((out_channels, C), lambda b, j: (0, 0)),
            ],
            out_specs=pl.BlockSpec((1, out_channels, thw), lambda b, j: (b, 0, j)),
        ),
        compiler_params=pltpu.CompilerParams(
            dimension_semantics=("parallel", "parallel"),
        ),
        cost_estimate=cost,
    )(x3, pool_mat_t)

    return y3.reshape(B, out_channels, H, W)   # free reshape back to NCHW


def _reference_numpy(x: np.ndarray, out_channels: int) -> np.ndarray:
    """Direct numpy re-implementation of the PyTorch forward for validation."""
    B, C, H, W = x.shape
    rows = np.transpose(x, (0, 2, 3, 1)).reshape(B * H * W, C)
    out = np.empty((B * H * W, out_channels), dtype=np.float32)
    for o in range(out_channels):
        start = (o * C) // out_channels
        end = math.ceil((o + 1) * C / out_channels)
        out[:, o] = rows[:, start:end].mean(axis=1)
    return np.transpose(out.reshape(B, H, W, out_channels), (0, 3, 1, 2))


if __name__ == "__main__":
    B, C, H, W = 2, 16, 16, 16
    OUT_CHANNELS = 384  # module default

    key = jax.random.PRNGKey(0)
    x = jax.random.normal(key, (B, C, H, W), dtype=jnp.float32)

    y = jax.block_until_ready(channel_pooler(x, out_channels=OUT_CHANNELS))

    assert y.shape == (B, OUT_CHANNELS, H, W), y.shape

    ref = _reference_numpy(np.asarray(x), OUT_CHANNELS)
    np.testing.assert_allclose(np.asarray(y), ref, rtol=1e-5, atol=1e-5)

    print("KERNEL_OK")
</pallas_src>

<mosaic_0001>
module attributes {stable_mosaic.version = 11 : i64} {
  func.func @_pool_kernel(%arg0: i32, %arg1: i32, %arg2: memref<1x16x256xf32, #tpu.memory_space<vmem>>, %arg3: memref<384x16xf32, #tpu.memory_space<vmem>>, %arg4: memref<1x384x256xf32, #tpu.memory_space<vmem>>) attributes {dimension_semantics = [#tpu.dimension_semantics<parallel>, #tpu.dimension_semantics<parallel>], iteration_bounds = array<i64: 2, 1>, scalar_prefetch = 0 : i64, scratch_operands = 0 : i64, tpu.core_type = #tpu.core_type<tc>, window_params = [{transform_indices = @transform_0, window_bounds = array<i64: 1, 16, 256>}, {pipeline_mode = #tpu.pipeline_mode<synchronous>, transform_indices = @transform_1, window_bounds = array<i64: 384, 16>}, {transform_indices = @transform_2, window_bounds = array<i64: 1, 384, 256>}]} {
    %c0 = arith.constant 0 : index
    %c0_0 = arith.constant 0 : index
    %0 = vector.load %arg3[%c0, %c0_0] : memref<384x16xf32, #tpu.memory_space<vmem>>, vector<384x16xf32>
    %c0_1 = arith.constant 0 : index
    %c0_2 = arith.constant 0 : index
    %c0_3 = arith.constant 0 : index
    %1 = vector.load %arg2[%c0_1, %c0_2, %c0_3] : memref<1x16x256xf32, #tpu.memory_space<vmem>>, vector<1x16x256xf32>
    %2 = vector.shape_cast %1 : vector<1x16x256xf32> to vector<16x256xf32>
    %cst = arith.constant dense<0.000000e+00> : vector<384x256xf32>
    %3 = tpu.matmul %0, %2, %cst {dimension_numbers = #tpu.dot_dimension_numbers<[1], [0], [0], [1], [0, 0, 1, 1], [], []>} : vector<384x16xf32>, vector<16x256xf32>, vector<384x256xf32> -> vector<384x256xf32>
    %c0_4 = arith.constant 0 : index
    %c0_5 = arith.constant 0 : index
    %c0_6 = arith.constant 0 : index
    %4 = vector.load %arg4[%c0_4, %c0_5, %c0_6] : memref<1x384x256xf32, #tpu.memory_space<vmem>>, vector<1x384x256xf32>
    %5 = vector.shape_cast %4 : vector<1x384x256xf32> to vector<384x256xf32>
    %6 = vector.shape_cast %3 : vector<384x256xf32> to vector<1x384x256xf32>
    tpu.vector_store %arg4[%c0_4, %c0_5, %c0_6], %6 {strides = array<i32>} : memref<1x384x256xf32, #tpu.memory_space<vmem>>, vector<1x384x256xf32>,
    return
  }
  func.func @transform_0(%arg0: i32, %arg1: i32) -> (i32, i32, i32) {
    %c0_i32 = arith.constant 0 : i32
    %c0_i32_0 = arith.constant 0 : i32
    return %arg0, %c0_i32, %arg1 : i32, i32, i32
  }
  func.func @transform_1(%arg0: i32, %arg1: i32) -> (i32, i32) {
    %c0_i32 = arith.constant 0 : i32
    %c0_i32_0 = arith.constant 0 : i32
    %c0_i32_1 = arith.constant 0 : i32
    return %c0_i32, %c0_i32_0 : i32, i32
  }
  func.func @transform_2(%arg0: i32, %arg1: i32) -> (i32, i32, i32) {
    %c0_i32 = arith.constant 0 : i32
    %c0_i32_0 = arith.constant 0 : i32
    return %arg0, %c0_i32, %arg1 : i32, i32, i32
  }
}

</mosaic_0001>

<bundles_post_ra>
// kernel: tpu_custom_call.1
= control target key start
LH: loop header
LB: loop body
LE: loop exit
PB: predicated region body
PF: predicated region fallthrough
CT: control target
= control target key end

     0   :  { %7 = vsyncpa [#allocation3], 0  ;;  %s1591_s0 = inlined_call_operand.vmem [shape: f32[2,16,256], index: 0, kind: input, shape index: {}]   ;;  %s1592_s1 = inlined_call_operand.vmem [shape: f32[384,16], index: 1, kind: input, shape index: {}]   ;;  %s1593_s2 = inlined_call_operand.hbm [shape: f32[2,384,256], index: 2, kind: output, shape index: {}]  }
   0x1   :  { %9 = vsyncpa [#allocation3 + $0x1], 0  ;;  %s1134_s9 = smov 0   ;;  %s1136_s10 = smov 0  }
   0x2   :  { %s1138_s11 = smov 0   ;;  %s1140_s12 = smov 0  }
   0x3   :  { %s1142_s13 = smov 0   ;;  %s1144_s14 = smov 0  }
   0x4 LB: > { %s914_s15 = sadd.s32 4294967295, %s1113_s14   ;;  %s915_s16 = sadd.s32 4294967294, %s1113_s14   ;;  %s1113_s14 = sphi %s1144_s14, %s15_s14   ;;  %s1109_s13 = sphi %s1142_s13, %s1600_s13   ;;  %s1105_s12 = sphi %s1140_s12, %s1599_s12   ;;  %s1101_s11 = sphi %s1138_s11, %s1598_s11   ;;  %s1097_s10 = sphi %s1136_s10, %s1597_s10   ;;  %s1093_s9 = sphi %s1134_s9, %s1596_s9  }
   0x5   : > { %s27_s17 = sadd.s32 1, %s1109_s13  ;;  %s85_s18 = sadd.s32 1, %s1101_s11 }
   0x6   : > { %p29_p0 = scmp.ge.s32.totalorder %s27_s17, 2  ;;  %p95_p1 = scmp.ne.s32.totalorder %s1101_s11, %s1097_s10 }
   0x7   : > { %p96_p2 = scmp.eq.s32.totalorder %s914_s15, 1  ;;  %p101_p3 = scmp.ne.s32.totalorder %s1097_s10, %s1093_s9 }
   0x8   : > { %s1602_s17 = smov (%p29_p0, %s27_s17), 0  ;;  %p102_p5 = scmp.eq.s32.totalorder %s915_s16, 1 }
   0x9   : > { %p1174_p4 = por %p96_p2, %p95_p1  ;;  %s80_s20 = ssub.s32 %s1109_s13, %s1602_s17 }
   0xa   : > { %p918_p6 = scmp.ge.s32.totalorder %s1113_s14, 1  ;;  %p83_p7 = scmp.eq.s32.totalorder %s80_s20, 0 }
   0xb   : > { %p1181_p8 = por %p102_p5, %p101_p3  ;;  %p136_p9 = scmp.lt.s32.totalorder %s1113_s14, 3 }
   0xc   : > { %s1187_s22 = scalar_select %p83_p7, %s1101_s11, %s85_s18  }
   0xd   : > { %p137_p10 = pnand %p918_p6, %p136_p9 }
   0xe   : > { %p163_p11 = scmp.lt.s32.totalorder (!%p137_p10), %s1105_s12, 1  ;;  %s159_s6 = sand.u32 (!%p137_p10), 1, %s1097_s10  }
   0xf   : > { %140 = sbr.rel (%p137_p10) target bundleno = 330 (0x14a), region = 28  ;;  %s1116_s25 = smov (!%p137_p10), [#allocation2]  }
  0x10   : > { %s977_s7 = smul.u32 (!%p137_p10), 768, %s159_s6  ;;  %s1041_s26 = sshll.u32 (!%p137_p10), %s1116_s25, 4  ;;  %s1042_s26 = int_to_ptr.vmem [resolvable:$false] %s1041_s26 }
  0x11   : > { %s978_s15 = smul.u32 (!%p137_p10), 12288, %s1105_s12 }
  0x12   : > { %s1437_s8 = scalar_lea.vmem (!%p137_p10), [#allocation2], %s977_s7 }
  0x13   : > { %s835_s16 = sshll.u32 (!%p137_p10), %s1437_s8, 4  ;;  %s1538_s16 = int_to_ptr.vmem [resolvable:$true] %s835_s16 }
  0x14   : > { %v1115_v0 = vmov 0.0   ;;  %s164_s23 = scalar_select %p163_p11, %s1105_s12, 1  ;;  %v173_v5 = vld [vmem:[%s1592_s1] sm:$0xff]  ;;  %vm225_vm0 = vcmask 130048   ;;  %v174_v7 = vld [vmem:[%s1592_s1 + $0x8] sm:$0xff]  ;;  %v175_v9 = vld [vmem:[%s1592_s1 + $0x10] sm:$0xff] }
  0x15   : > { %434 = vmatprep.mubr.f32.mxu0 %v1115_v0  ;;  %578 = vmatprep.mubr.f32.mxu1 %v1115_v0  ;;  %v197_v6 = vld [vmem:[%s1592_s1 + $0xc0] sm:$0xff]  ;;  %v198_v8 = vld [vmem:[%s1592_s1 + $0xc8] sm:$0xff]  ;;  %v199_v10 = vld [vmem:[%s1592_s1 + $0xd0] sm:$0xff]  ;;  %s1546_s12 = scalar_lea.sflag [#allocation3], %s159_s6  ;;  %p1044_p1 = scmp.lt.s32.totalorder %s1538_s16, %s1042_s26 }
  0x16   : > { %s972_s24 = sshll.u32 %s164_s23, 5  ;;  %v176_v11 = vld [vmem:[%s1592_s1 + $0x18] sm:$0xff]  ;;  %v177_v13 = vld [vmem:[%s1592_s1 + $0x20] sm:$0xff]  ;;  %v178_v15 = vld [vmem:[%s1592_s1 + $0x28] sm:$0xff]  ;;  %s1536_s23 = scalar_lea.hbm %s1593_s2, %s978_s15 }
  0x17   : > { %s170_s27 = scalar_lea.vmem %s1591_s0, %s972_s24  ;;  %v200_v12 = vld [vmem:[%s1592_s1 + $0xd8] sm:$0xff]  ;;  %v201_v14 = vld [vmem:[%s1592_s1 + $0xe0] sm:$0xff]  ;;  %v202_v16 = vld [vmem:[%s1592_s1 + $0xe8] sm:$0xff]  ;;  %s1037_s24 = scalar_lea.vmem %s1538_s16, 12288 }
  0x18   : > { %v224_v1 = vld [vmem:[%s170_s27 + $0x18] sm:$0xff]  ;;  %v223_v2 = vld [vmem:[%s170_s27 + $0x10] sm:$0xff]  ;;  %v222_v3 = vld [vmem:[%s170_s27 + $0x8] sm:$0xff]  ;;  %p1038_p12 = scmp.ne.s32.totalorder %s1538_s16, %s1037_s24 }
  0x19   : > { %398 = vmatprep.subr.mxu0 %v224_v1  ;;  %973 = vmatprep.subr.mxu1 %v224_v1  ;;  %v221_v4 = vld [vmem:[%s170_s27] sm:$0xff]  ;;  %v179_v17 = vld [vmem:[%s1592_s1 + $0x30] sm:$0xff]  ;;  %v180_v19 = vld [vmem:[%s1592_s1 + $0x38] sm:$0xff]  ;;  %s1043_s27 = scalar_lea.vmem %s1042_s26, 24576 }
  0x1a   : > { %399 = vmatpush1.msra.mxu0 %v223_v2  ;;  %975 = vmatpush1.msra.mxu1 %v223_v2  ;;  %v203_v18 = vld [vmem:[%s1592_s1 + $0xf0] sm:$0xff]  ;;  %v204_v20 = vld [vmem:[%s1592_s1 + $0xf8] sm:$0xff]  ;;  %v181_v21 = vld [vmem:[%s1592_s1 + $0x40] sm:$0xff]  ;;  %p1039_p13 = pnand %p1038_p12, %p1174_p4  ;;  %p1045_p2 = scmp.lt.s32.totalorder %s1043_s27, %s1037_s24 }
  0x1b   : > { %400 = vmatprep.subr.mxu0 %v222_v3  ;;  %974 = vmatprep.subr.mxu1 %v222_v3  ;;  %v205_v22 = vld [vmem:[%s1592_s1 + $0x100] sm:$0xff]  ;;  %v182_v23 = vld [vmem:[%s1592_s1 + $0x48] sm:$0xff]  ;;  %v183_v25 = vld [vmem:[%s1592_s1 + $0x50] sm:$0xff] }
  0x1c   : > { %401 = vmatpush1.msra.mxu0 %v221_v4  ;;  %976 = vmatpush1.msra.mxu1 %v221_v4  ;;  %v206_v24 = vld [vmem:[%s1592_s1 + $0x108] sm:$0xff]  ;;  %v207_v26 = vld [vmem:[%s1592_s1 + $0x110] sm:$0xff]  ;;  %v184_v27 = vld [vmem:[%s1592_s1 + $0x58] sm:$0xff]  ;;  %p1040_p0 = pneg %p1039_p13  ;;  %p1046_p3 = por %p1045_p2, %p1044_p1 }
  0x1d   : > { %921 = vmatmul.mubr.msk.f32.vlgmr.msra.gmra.mxu0 %vm225_vm0, %v173_v5  ;;  %945 = vmatmul.mubr.msk.f32.vlgmr.msra.gmra.mxu1 %vm225_vm0, %v197_v6  ;;  %v208_v28 = vld [vmem:[%s1592_s1 + $0x118] sm:$0xff]  ;;  %v185_v29 = vld [vmem:[%s1592_s1 + $0x60] sm:$0xff]  ;;  %v186_v31 = vld [vmem:[%s1592_s1 + $0x68] sm:$0xff] }
  0x1e   : > { %440 = vmatprep.mubr.f32.mxu0 %v1115_v0  ;;  %584 = vmatprep.mubr.f32.mxu1 %v1115_v0  ;;  %v209_v30 = vld [vmem:[%s1592_s1 + $0x120] sm:$0xff]  ;;  %v210_v32 = vld [vmem:[%s1592_s1 + $0x128] sm:$0xff]  ;;  %v187_v33 = vld [vmem:[%s1592_s1 + $0x70] sm:$0xff]  ;;  %p1047_p5 = pnand %p1046_p3, %p1040_p0 }
  0x1f   : > { %v211_v34 = vld [vmem:[%s1592_s1 + $0x130] sm:$0xff]  ;;  %v188_v35 = vld [vmem:[%s1592_s1 + $0x78] sm:$0xff]  ;;  %v189_v37 = vld [vmem:[%s1592_s1 + $0x80] sm:$0xff] }
  0x20   : > { %v212_v36 = vld [vmem:[%s1592_s1 + $0x138] sm:$0xff]  ;;  %v213_v38 = vld [vmem:[%s1592_s1 + $0x140] sm:$0xff]  ;;  %v190_v39 = vld [vmem:[%s1592_s1 + $0x88] sm:$0xff] }
  0x21   : > { %922 = vmatmul.mubr.msk.f32.gmra.mxu0 %vm225_vm0, %v174_v7  ;;  %946 = vmatmul.mubr.msk.f32.gmra.mxu1 %vm225_vm0, %v198_v8  ;;  %v214_v40 = vld [vmem:[%s1592_s1 + $0x148] sm:$0xff]  ;;  %v191_v41 = vld [vmem:[%s1592_s1 + $0x90] sm:$0xff]  ;;  %v192_v43 = vld [vmem:[%s1592_s1 + $0x98] sm:$0xff] }
  0x22   : > { %446 = vmatprep.mubr.f32.mxu0 %v1115_v0  ;;  %590 = vmatprep.mubr.f32.mxu1 %v1115_v0  ;;  %v215_v42 = vld [vmem:[%s1592_s1 + $0x150] sm:$0xff]  ;;  %v216_v44 = vld [vmem:[%s1592_s1 + $0x158] sm:$0xff]  ;;  %v193_v45 = vld [vmem:[%s1592_s1 + $0xa0] sm:$0xff] }
  0x23   : > { %v217_v46 = vld [vmem:[%s1592_s1 + $0x160] sm:$0xff]  ;;  %v194_v47 = vld [vmem:[%s1592_s1 + $0xa8] sm:$0xff]  ;;  %v195_v49 = vld [vmem:[%s1592_s1 + $0xb0] sm:$0xff] }
  0x24   : > { %v218_v48 = vld [vmem:[%s1592_s1 + $0x168] sm:$0xff]  ;;  %v219_v50 = vld [vmem:[%s1592_s1 + $0x170] sm:$0xff]  ;;  %v196_v51 = vld [vmem:[%s1592_s1 + $0xb8] sm:$0xff] }
  0x25   : > { %923 = vmatmul.mubr.msk.f32.gmra.mxu0 %vm225_vm0, %v175_v9  ;;  %947 = vmatmul.mubr.msk.f32.gmra.mxu1 %vm225_vm0, %v199_v10  ;;  %v220_v52 = vld [vmem:[%s1592_s1 + $0x178] sm:$0xff] }
  0x26   : > { %452 = vmatprep.mubr.f32.mxu0 %v1115_v0  ;;  %596 = vmatprep.mubr.f32.mxu1 %v1115_v0 }
  0x29   : > { %924 = vmatmul.mubr.msk.f32.gmra.mxu0 %vm225_vm0, %v176_v11  ;;  %948 = vmatmul.mubr.msk.f32.gmra.mxu1 %vm225_vm0, %v200_v12 }
  0x2a   : > { %458 = vmatprep.mubr.f32.mxu0 %v1115_v0  ;;  %602 = vmatprep.mubr.f32.mxu1 %v1115_v0 }
  0x2d   : > { %925 = vmatmul.mubr.msk.f32.gmra.mxu0 %vm225_vm0, %v177_v13  ;;  %949 = vmatmul.mubr.msk.f32.gmra.mxu1 %vm225_vm0, %v201_v14 }
  0x2e   : > { %464 = vmatprep.mubr.f32.mxu0 %v1115_v0  ;;  %608 = vmatprep.mubr.f32.mxu1 %v1115_v0 }
  0x31   : > { %926 = vmatmul.mubr.msk.f32.gmra.mxu0 %vm225_vm0, %v178_v15  ;;  %950 = vmatmul.mubr.msk.f32.gmra.mxu1 %vm225_vm0, %v202_v16 }
  0x32   : > { %470 = vmatprep.mubr.f32.mxu0 %v1115_v0  ;;  %614 = vmatprep.mubr.f32.mxu1 %v1115_v0 }
  0x35   : > { %927 = vmatmul.mubr.msk.f32.gmra.mxu0 %vm225_vm0, %v179_v17  ;;  %951 = vmatmul.mubr.msk.f32.gmra.mxu1 %vm225_vm0, %v203_v18 }
  0x36   : > { %476 = vmatprep.mubr.f32.mxu0 %v1115_v0  ;;  %620 = vmatprep.mubr.f32.mxu1 %v1115_v0 }
  0x39   : > { %928 = vmatmul.mubr.msk.f32.gmra.mxu0 %vm225_vm0, %v180_v19  ;;  %952 = vmatmul.mubr.msk.f32.gmra.mxu1 %vm225_vm0, %v204_v20 }
  0x3a   : > { %482 = vmatprep.mubr.f32.mxu0 %v1115_v0  ;;  %626 = vmatprep.mubr.f32.mxu1 %v1115_v0 }
  0x3d   : > { %929 = vmatmul.mubr.msk.f32.gmra.mxu0 %vm225_vm0, %v181_v21  ;;  %953 = vmatmul.mubr.msk.f32.gmra.mxu1 %vm225_vm0, %v205_v22 }
  0x3e   : > { %488 = vmatprep.mubr.f32.mxu0 %v1115_v0  ;;  %632 = vmatprep.mubr.f32.mxu1 %v1115_v0 }
  0x41   : > { %930 = vmatmul.mubr.msk.f32.gmra.mxu0 %vm225_vm0, %v182_v23  ;;  %954 = vmatmul.mubr.msk.f32.gmra.mxu1 %vm225_vm0, %v206_v24 }
  0x42   : > { %494 = vmatprep.mubr.f32.mxu0 %v1115_v0  ;;  %638 = vmatprep.mubr.f32.mxu1 %v1115_v0 }
  0x45   : > { %931 = vmatmul.mubr.msk.f32.gmra.mxu0 %vm225_vm0, %v183_v25  ;;  %955 = vmatmul.mubr.msk.f32.gmra.mxu1 %vm225_vm0, %v207_v26 }
  0x46   : > { %500 = vmatprep.mubr.f32.mxu0 %v1115_v0  ;;  %644 = vmatprep.mubr.f32.mxu1 %v1115_v0 }
  0x49   : > { %932 = vmatmul.mubr.msk.f32.gmra.mxu0 %vm225_vm0, %v184_v27  ;;  %956 = vmatmul.mubr.msk.f32.gmra.mxu1 %vm225_vm0, %v208_v28 }
  0x4a   : > { %506 = vmatprep.mubr.f32.mxu0 %v1115_v0  ;;  %650 = vmatprep.mubr.f32.mxu1 %v1115_v0 }
  0x4d   : > { %933 = vmatmul.mubr.msk.f32.gmra.mxu0 %vm225_vm0, %v185_v29  ;;  %957 = vmatmul.mubr.msk.f32.gmra.mxu1 %vm225_vm0, %v209_v30 }
  0x4e   : > { %512 = vmatprep.mubr.f32.mxu0 %v1115_v0  ;;  %656 = vmatprep.mubr.f32.mxu1 %v1115_v0 }
  0x51   : > { %934 = vmatmul.mubr.msk.f32.gmra.mxu0 %vm225_vm0, %v186_v31  ;;  %958 = vmatmul.mubr.msk.f32.gmra.mxu1 %vm225_vm0, %v210_v32 }
  0x52   : > { %518 = vmatprep.mubr.f32.mxu0 %v1115_v0  ;;  %662 = vmatprep.mubr.f32.mxu1 %v1115_v0 }
  0x55   : > { %935 = vmatmul.mubr.msk.f32.gmra.mxu0 %vm225_vm0, %v187_v33  ;;  %959 = vmatmul.mubr.msk.f32.gmra.mxu1 %vm225_vm0, %v211_v34 }
  0x56   : > { %524 = vmatprep.mubr.f32.mxu0 %v1115_v0  ;;  %668 = vmatprep.mubr.f32.mxu1 %v1115_v0 }
  0x59   : > { %936 = vmatmul.mubr.msk.f32.gmra.mxu0 %vm225_vm0, %v188_v35  ;;  %960 = vmatmul.mubr.msk.f32.gmra.mxu1 %vm225_vm0, %v212_v36 }
  0x5a   : > { %530 = vmatprep.mubr.f32.mxu0 %v1115_v0  ;;  %674 = vmatprep.mubr.f32.mxu1 %v1115_v0 }
  0x5d   : > { %937 = vmatmul.mubr.msk.f32.gmra.mxu0 %vm225_vm0, %v189_v37  ;;  %961 = vmatmul.mubr.msk.f32.gmra.mxu1 %vm225_vm0, %v213_v38 }
  0x5e   : > { %536 = vmatprep.mubr.f32.mxu0 %v1115_v0  ;;  %680 = vmatprep.mubr.f32.mxu1 %v1115_v0 }
  0x61   : > { %938 = vmatmul.mubr.msk.f32.gmra.mxu0 %vm225_vm0, %v190_v39  ;;  %962 = vmatmul.mubr.msk.f32.gmra.mxu1 %vm225_vm0, %v214_v40 }
  0x62   : > { %542 = vmatprep.mubr.f32.mxu0 %v1115_v0  ;;  %686 = vmatprep.mubr.f32.mxu1 %v1115_v0 }
  0x65   : > { %939 = vmatmul.mubr.msk.f32.gmra.mxu0 %vm225_vm0, %v191_v41  ;;  %963 = vmatmul.mubr.msk.f32.gmra.mxu1 %vm225_vm0, %v215_v42 }
  0x66   : > { %548 = vmatprep.mubr.f32.mxu0 %v1115_v0  ;;  %692 = vmatprep.mubr.f32.mxu1 %v1115_v0 }
  0x69   : > { %940 = vmatmul.mubr.msk.f32.gmra.mxu0 %vm225_vm0, %v192_v43  ;;  %964 = vmatmul.mubr.msk.f32.gmra.mxu1 %vm225_vm0, %v216_v44 }
  0x6a   : > { %554 = vmatprep.mubr.f32.mxu0 %v1115_v0  ;;  %698 = vmatprep.mubr.f32.mxu1 %v1115_v0 }
  0x6d   : > { %941 = vmatmul.mubr.msk.f32.gmra.mxu0 %vm225_vm0, %v193_v45  ;;  %965 = vmatmul.mubr.msk.f32.gmra.mxu1 %vm225_vm0, %v217_v46 }
  0x6e   : > { %560 = vmatprep.mubr.f32.mxu0 %v1115_v0  ;;  %704 = vmatprep.mubr.f32.mxu1 %v1115_v0 }
  0x71   : > { %942 = vmatmul.mubr.msk.f32.gmra.mxu0 %vm225_vm0, %v194_v47  ;;  %966 = vmatmul.mubr.msk.f32.gmra.mxu1 %vm225_vm0, %v218_v48 }
  0x72   : > { %566 = vmatprep.mubr.f32.mxu0 %v1115_v0  ;;  %710 = vmatprep.mubr.f32.mxu1 %v1115_v0 }
  0x75   : > { %943 = vmatmul.mubr.msk.f32.gmra.mxu0 %vm225_vm0, %v195_v49  ;;  %967 = vmatmul.mubr.msk.f32.gmra.mxu1 %vm225_vm0, %v219_v50 }
  0x76   : > { %572 = vmatprep.mubr.f32.mxu0 %v1115_v0  ;;  %716 = vmatprep.mubr.f32.mxu1 %v1115_v0 }
  0x79   : > { %944 = vmatmul.mubr.msk.f32.gmra.mxu0 %vm225_vm0, %v196_v51  ;;  %968 = vmatmul.mubr.msk.f32.gmra.mxu1 %vm225_vm0, %v220_v52 }
  0xdd   : > { %v436_v53 = vpop.f32.mrf.mxu0  ;;  %v580_v54 = vpop.f32.mrf.mxu1 }
  0xde   : > { %723 = vst [vmem:[%s1437_s8] sm:$0xff] %v436_v53  ;;  %771 = vst [vmem:[%s1437_s8 + $0x180] sm:$0xff] %v580_v54 }
  0xdf   : > { %v438_v55 = vpop.f32.mrf.mxu0  ;;  %v582_v56 = vpop.f32.mrf.mxu1 }
  0xe0   : > { %724 = vst [vmem:[%s1437_s8 + $0x8] sm:$0xff] %v438_v55  ;;  %772 = vst [vmem:[%s1437_s8 + $0x188] sm:$0xff] %v582_v56 }
  0xe1   : > { %v442_v57 = vpop.f32.mrf.mxu0  ;;  %v586_v58 = vpop.f32.mrf.mxu1 }
  0xe2   : > { %725 = vst [vmem:[%s1437_s8 + $0x10] sm:$0xff] %v442_v57  ;;  %773 = vst [vmem:[%s1437_s8 + $0x190] sm:$0xff] %v586_v58 }
  0xe3   : > { %v444_v59 = vpop.f32.mrf.mxu0  ;;  %v588_v60 = vpop.f32.mrf.mxu1 }
  0xe4   : > { %726 = vst [vmem:[%s1437_s8 + $0x18] sm:$0xff] %v444_v59  ;;  %774 = vst [vmem:[%s1437_s8 + $0x198] sm:$0xff] %v588_v60 }
  0xe5   : > { %v448_v61 = vpop.f32.mrf.mxu0  ;;  %v592_v62 = vpop.f32.mrf.mxu1 }
  0xe6   : > { %727 = vst [vmem:[%s1437_s8 + $0x20] sm:$0xff] %v448_v61  ;;  %775 = vst [vmem:[%s1437_s8 + $0x1a0] sm:$0xff] %v592_v62 }
  0xe7   : > { %v450_v63 = vpop.f32.mrf.mxu0  ;;  %v594_v0 = vpop.f32.mrf.mxu1 }
  0xe8   : > { %728 = vst [vmem:[%s1437_s8 + $0x28] sm:$0xff] %v450_v63  ;;  %776 = vst [vmem:[%s1437_s8 + $0x1a8] sm:$0xff] %v594_v0 }
  0xe9   : > { %v454_v1 = vpop.f32.mrf.mxu0  ;;  %v598_v2 = vpop.f32.mrf.mxu1 }
  0xea   : > { %729 = vst [vmem:[%s1437_s8 + $0x30] sm:$0xff] %v454_v1  ;;  %777 = vst [vmem:[%s1437_s8 + $0x1b0] sm:$0xff] %v598_v2 }
  0xeb   : > { %v456_v3 = vpop.f32.mrf.mxu0  ;;  %v600_v4 = vpop.f32.mrf.mxu1 }
  0xec   : > { %730 = vst [vmem:[%s1437_s8 + $0x38] sm:$0xff] %v456_v3  ;;  %778 = vst [vmem:[%s1437_s8 + $0x1b8] sm:$0xff] %v600_v4 }
  0xed   : > { %v460_v5 = vpop.f32.mrf.mxu0  ;;  %v604_v6 = vpop.f32.mrf.mxu1 }
  0xee   : > { %731 = vst [vmem:[%s1437_s8 + $0x40] sm:$0xff] %v460_v5  ;;  %779 = vst [vmem:[%s1437_s8 + $0x1c0] sm:$0xff] %v604_v6 }
  0xef   : > { %v462_v7 = vpop.f32.mrf.mxu0  ;;  %v606_v8 = vpop.f32.mrf.mxu1 }
  0xf0   : > { %732 = vst [vmem:[%s1437_s8 + $0x48] sm:$0xff] %v462_v7  ;;  %780 = vst [vmem:[%s1437_s8 + $0x1c8] sm:$0xff] %v606_v8 }
  0xf1   : > { %v466_v9 = vpop.f32.mrf.mxu0  ;;  %v610_v10 = vpop.f32.mrf.mxu1 }
  0xf2   : > { %733 = vst [vmem:[%s1437_s8 + $0x50] sm:$0xff] %v466_v9  ;;  %781 = vst [vmem:[%s1437_s8 + $0x1d0] sm:$0xff] %v610_v10 }
  0xf3   : > { %v468_v11 = vpop.f32.mrf.mxu0  ;;  %v612_v12 = vpop.f32.mrf.mxu1 }
  0xf4   : > { %734 = vst [vmem:[%s1437_s8 + $0x58] sm:$0xff] %v468_v11  ;;  %782 = vst [vmem:[%s1437_s8 + $0x1d8] sm:$0xff] %v612_v12 }
  0xf5   : > { %v472_v13 = vpop.f32.mrf.mxu0  ;;  %v616_v14 = vpop.f32.mrf.mxu1 }
  0xf6   : > { %735 = vst [vmem:[%s1437_s8 + $0x60] sm:$0xff] %v472_v13  ;;  %783 = vst [vmem:[%s1437_s8 + $0x1e0] sm:$0xff] %v616_v14 }
  0xf7   : > { %v474_v15 = vpop.f32.mrf.mxu0  ;;  %v618_v16 = vpop.f32.mrf.mxu1 }
  0xf8   : > { %736 = vst [vmem:[%s1437_s8 + $0x68] sm:$0xff] %v474_v15  ;;  %784 = vst [vmem:[%s1437_s8 + $0x1e8] sm:$0xff] %v618_v16 }
  0xf9   : > { %v478_v17 = vpop.f32.mrf.mxu0  ;;  %v622_v18 = vpop.f32.mrf.mxu1 }
  0xfa   : > { %737 = vst [vmem:[%s1437_s8 + $0x70] sm:$0xff] %v478_v17  ;;  %785 = vst [vmem:[%s1437_s8 + $0x1f0] sm:$0xff] %v622_v18 }
  0xfb   : > { %v480_v19 = vpop.f32.mrf.mxu0  ;;  %v624_v20 = vpop.f32.mrf.mxu1 }
  0xfc   : > { %738 = vst [vmem:[%s1437_s8 + $0x78] sm:$0xff] %v480_v19  ;;  %786 = vst [vmem:[%s1437_s8 + $0x1f8] sm:$0xff] %v624_v20 }
  0xfd   : > { %v484_v21 = vpop.f32.mrf.mxu0  ;;  %v628_v22 = vpop.f32.mrf.mxu1 }
  0xfe   : > { %739 = vst [vmem:[%s1437_s8 + $0x80] sm:$0xff] %v484_v21  ;;  %787 = vst [vmem:[%s1437_s8 + $0x200] sm:$0xff] %v628_v22 }
  0xff   : > { %v486_v23 = vpop.f32.mrf.mxu0  ;;  %v630_v24 = vpop.f32.mrf.mxu1 }
 0x100   : > { %740 = vst [vmem:[%s1437_s8 + $0x88] sm:$0xff] %v486_v23  ;;  %788 = vst [vmem:[%s1437_s8 + $0x208] sm:$0xff] %v630_v24 }
 0x101   : > { %v490_v25 = vpop.f32.mrf.mxu0  ;;  %v634_v26 = vpop.f32.mrf.mxu1 }
 0x102   : > { %741 = vst [vmem:[%s1437_s8 + $0x90] sm:$0xff] %v490_v25  ;;  %789 = vst [vmem:[%s1437_s8 + $0x210] sm:$0xff] %v634_v26 }
 0x103   : > { %v492_v27 = vpop.f32.mrf.mxu0  ;;  %v636_v28 = vpop.f32.mrf.mxu1 }
 0x104   : > { %742 = vst [vmem:[%s1437_s8 + $0x98] sm:$0xff] %v492_v27  ;;  %790 = vst [vmem:[%s1437_s8 + $0x218] sm:$0xff] %v636_v28 }
 0x105   : > { %v496_v29 = vpop.f32.mrf.mxu0  ;;  %v640_v30 = vpop.f32.mrf.mxu1 }
 0x106   : > { %743 = vst [vmem:[%s1437_s8 + $0xa0] sm:$0xff] %v496_v29  ;;  %791 = vst [vmem:[%s1437_s8 + $0x220] sm:$0xff] %v640_v30 }
 0x107   : > { %v498_v31 = vpop.f32.mrf.mxu0  ;;  %v642_v32 = vpop.f32.mrf.mxu1 }
 0x108   : > { %744 = vst [vmem:[%s1437_s8 + $0xa8] sm:$0xff] %v498_v31  ;;  %792 = vst [vmem:[%s1437_s8 + $0x228] sm:$0xff] %v642_v32 }
 0x109   : > { %v502_v33 = vpop.f32.mrf.mxu0  ;;  %v646_v34 = vpop.f32.mrf.mxu1 }
 0x10a   : > { %745 = vst [vmem:[%s1437_s8 + $0xb0] sm:$0xff] %v502_v33  ;;  %793 = vst [vmem:[%s1437_s8 + $0x230] sm:$0xff] %v646_v34 }
 0x10b   : > { %v504_v35 = vpop.f32.mrf.mxu0  ;;  %v648_v36 = vpop.f32.mrf.mxu1 }
 0x10c   : > { %746 = vst [vmem:[%s1437_s8 + $0xb8] sm:$0xff] %v504_v35  ;;  %794 = vst [vmem:[%s1437_s8 + $0x238] sm:$0xff] %v648_v36 }
 0x10d   : > { %v508_v37 = vpop.f32.mrf.mxu0  ;;  %v652_v38 = vpop.f32.mrf.mxu1 }
 0x10e   : > { %747 = vst [vmem:[%s1437_s8 + $0xc0] sm:$0xff] %v508_v37  ;;  %795 = vst [vmem:[%s1437_s8 + $0x240] sm:$0xff] %v652_v38 }
 0x10f   : > { %v510_v39 = vpop.f32.mrf.mxu0  ;;  %v654_v40 = vpop.f32.mrf.mxu1 }
 0x110   : > { %748 = vst [vmem:[%s1437_s8 + $0xc8] sm:$0xff] %v510_v39  ;;  %796 = vst [vmem:[%s1437_s8 + $0x248] sm:$0xff] %v654_v40 }
 0x111   : > { %v514_v41 = vpop.f32.mrf.mxu0  ;;  %v658_v42 = vpop.f32.mrf.mxu1 }
 0x112   : > { %749 = vst [vmem:[%s1437_s8 + $0xd0] sm:$0xff] %v514_v41  ;;  %797 = vst [vmem:[%s1437_s8 + $0x250] sm:$0xff] %v658_v42 }
 0x113   : > { %v516_v43 = vpop.f32.mrf.mxu0  ;;  %v660_v44 = vpop.f32.mrf.mxu1 }
 0x114   : > { %750 = vst [vmem:[%s1437_s8 + $0xd8] sm:$0xff] %v516_v43  ;;  %798 = vst [vmem:[%s1437_s8 + $0x258] sm:$0xff] %v660_v44 }
 0x115   : > { %v520_v45 = vpop.f32.mrf.mxu0  ;;  %v664_v46 = vpop.f32.mrf.mxu1 }
 0x116   : > { %751 = vst [vmem:[%s1437_s8 + $0xe0] sm:$0xff] %v520_v45  ;;  %799 = vst [vmem:[%s1437_s8 + $0x260] sm:$0xff] %v664_v46 }
 0x117   : > { %v522_v47 = vpop.f32.mrf.mxu0  ;;  %v666_v48 = vpop.f32.mrf.mxu1 }
 0x118   : > { %752 = vst [vmem:[%s1437_s8 + $0xe8] sm:$0xff] %v522_v47  ;;  %800 = vst [vmem:[%s1437_s8 + $0x268] sm:$0xff] %v666_v48 }
 0x119   : > { %v526_v49 = vpop.f32.mrf.mxu0  ;;  %v670_v50 = vpop.f32.mrf.mxu1 }
 0x11a   : > { %753 = vst [vmem:[%s1437_s8 + $0xf0] sm:$0xff] %v526_v49  ;;  %801 = vst [vmem:[%s1437_s8 + $0x270] sm:$0xff] %v670_v50 }
 0x11b   : > { %v528_v51 = vpop.f32.mrf.mxu0  ;;  %v672_v52 = vpop.f32.mrf.mxu1 }
 0x11c   : > { %754 = vst [vmem:[%s1437_s8 + $0xf8] sm:$0xff] %v528_v51  ;;  %802 = vst [vmem:[%s1437_s8 + $0x278] sm:$0xff] %v672_v52 }
 0x11d   : > { %v532_v53 = vpop.f32.mrf.mxu0  ;;  %v676_v54 = vpop.f32.mrf.mxu1 }
 0x11e   : > { %755 = vst [vmem:[%s1437_s8 + $0x100] sm:$0xff] %v532_v53  ;;  %803 = vst [vmem:[%s1437_s8 + $0x280] sm:$0xff] %v676_v54 }
 0x11f   : > { %v534_v55 = vpop.f32.mrf.mxu0  ;;  %v678_v56 = vpop.f32.mrf.mxu1 }
 0x120   : > { %756 = vst [vmem:[%s1437_s8 + $0x108] sm:$0xff] %v534_v55  ;;  %804 = vst [vmem:[%s1437_s8 + $0x288] sm:$0xff] %v678_v56 }
 0x121   : > { %v538_v57 = vpop.f32.mrf.mxu0  ;;  %v682_v58 = vpop.f32.mrf.mxu1 }
 0x122   : > { %757 = vst [vmem:[%s1437_s8 + $0x110] sm:$0xff] %v538_v57  ;;  %805 = vst [vmem:[%s1437_s8 + $0x290] sm:$0xff] %v682_v58 }
 0x123   : > { %v540_v59 = vpop.f32.mrf.mxu0  ;;  %v684_v60 = vpop.f32.mrf.mxu1 }
 0x124   : > { %758 = vst [vmem:[%s1437_s8 + $0x118] sm:$0xff] %v540_v59  ;;  %806 = vst [vmem:[%s1437_s8 + $0x298] sm:$0xff] %v684_v60 }
 0x125   : > { %v544_v61 = vpop.f32.mrf.mxu0  ;;  %v688_v62 = vpop.f32.mrf.mxu1 }
 0x126   : > { %759 = vst [vmem:[%s1437_s8 + $0x120] sm:$0xff] %v544_v61  ;;  %807 = vst [vmem:[%s1437_s8 + $0x2a0] sm:$0xff] %v688_v62 }
 0x127   : > { %v546_v63 = vpop.f32.mrf.mxu0  ;;  %v690_v0 = vpop.f32.mrf.mxu1 }
 0x128   : > { %760 = vst [vmem:[%s1437_s8 + $0x128] sm:$0xff] %v546_v63  ;;  %808 = vst [vmem:[%s1437_s8 + $0x2a8] sm:$0xff] %v690_v0 }
 0x129   : > { %v550_v1 = vpop.f32.mrf.mxu0  ;;  %v694_v2 = vpop.f32.mrf.mxu1 }
 0x12a   : > { %761 = vst [vmem:[%s1437_s8 + $0x130] sm:$0xff] %v550_v1  ;;  %809 = vst [vmem:[%s1437_s8 + $0x2b0] sm:$0xff] %v694_v2 }
 0x12b   : > { %v552_v3 = vpop.f32.mrf.mxu0  ;;  %v696_v4 = vpop.f32.mrf.mxu1 }
 0x12c   : > { %762 = vst [vmem:[%s1437_s8 + $0x138] sm:$0xff] %v552_v3  ;;  %810 = vst [vmem:[%s1437_s8 + $0x2b8] sm:$0xff] %v696_v4 }
 0x12d   : > { %v556_v5 = vpop.f32.mrf.mxu0  ;;  %v700_v6 = vpop.f32.mrf.mxu1 }
 0x12e   : > { %763 = vst [vmem:[%s1437_s8 + $0x140] sm:$0xff] %v556_v5  ;;  %811 = vst [vmem:[%s1437_s8 + $0x2c0] sm:$0xff] %v700_v6 }
 0x12f   : > { %v558_v7 = vpop.f32.mrf.mxu0  ;;  %v702_v8 = vpop.f32.mrf.mxu1 }
 0x130   : > { %764 = vst [vmem:[%s1437_s8 + $0x148] sm:$0xff] %v558_v7  ;;  %812 = vst [vmem:[%s1437_s8 + $0x2c8] sm:$0xff] %v702_v8 }
 0x131   : > { %v562_v9 = vpop.f32.mrf.mxu0  ;;  %v706_v10 = vpop.f32.mrf.mxu1 }
 0x132   : > { %765 = vst [vmem:[%s1437_s8 + $0x150] sm:$0xff] %v562_v9  ;;  %813 = vst [vmem:[%s1437_s8 + $0x2d0] sm:$0xff] %v706_v10 }
 0x133   : > { %v564_v11 = vpop.f32.mrf.mxu0  ;;  %v708_v12 = vpop.f32.mrf.mxu1 }
 0x134   : > { %766 = vst [vmem:[%s1437_s8 + $0x158] sm:$0xff] %v564_v11  ;;  %814 = vst [vmem:[%s1437_s8 + $0x2d8] sm:$0xff] %v708_v12 }
 0x135   : > { %v568_v13 = vpop.f32.mrf.mxu0  ;;  %v712_v14 = vpop.f32.mrf.mxu1 }
 0x136   : > { %767 = vst [vmem:[%s1437_s8 + $0x160] sm:$0xff] %v568_v13  ;;  %815 = vst [vmem:[%s1437_s8 + $0x2e0] sm:$0xff] %v712_v14 }
 0x137   : > { %v570_v15 = vpop.f32.mrf.mxu0  ;;  %v714_v16 = vpop.f32.mrf.mxu1 }
 0x138   : > { %768 = vst [vmem:[%s1437_s8 + $0x168] sm:$0xff] %v570_v15  ;;  %816 = vst [vmem:[%s1437_s8 + $0x2e8] sm:$0xff] %v714_v16 }
 0x139   : > { %v574_v17 = vpop.f32.mrf.mxu0  ;;  %v718_v18 = vpop.f32.mrf.mxu1 }
 0x13a   : > { %769 = vst [vmem:[%s1437_s8 + $0x170] sm:$0xff] %v574_v17  ;;  %817 = vst [vmem:[%s1437_s8 + $0x2f0] sm:$0xff] %v718_v18 }
 0x13b   : > { %v576_v19 = vpop.f32.mrf.mxu0  ;;  %v720_v20 = vpop.f32.mrf.mxu1 }
 0x13c   : > { %770 = vst [vmem:[%s1437_s8 + $0x178] sm:$0xff] %v576_v19  ;;  %818 = vst [vmem:[%s1437_s8 + $0x2f8] sm:$0xff] %v720_v20 }
 0x13d   : > { %1050 = shalt.err (!%p1047_p5)
}
 0x13e   : > { %s1051_s28 = scalar_lea.hbm %s1536_s23, 12288  ;;  %s1055_s3 = scalar_lea.hbm %s1593_s2, 24576 }
 0x13f   : > { %p1052_p6 = scmp.ne.s32.totalorder %s1536_s23, %s1051_s28  ;;  %p1056_p10 = scmp.lt.s32.totalorder %s1536_s23, %s1593_s2 }
 0x140   : > { %p1057_p11 = scmp.lt.s32.totalorder %s1055_s3, %s1051_s28 }
 0x141   : > { %p1053_p7 = pnand %p1052_p6, %p1174_p4 }
 0x142   : > { %p1058_p12 = por %p1057_p11, %p1056_p10 }
 0x143   : > { %p1054_p9 = pneg %p1053_p7 }
 0x145   : > { %p1059_p13 = pnand %p1058_p12, %p1054_p9 }
 0x147   : > { %1062 = shalt.err (!%p1059_p13)
}
 0x148   : > { %s1117_s6 = smov 256   ;;  %s1118_s7 = smov 16  }
 0x149   : > { %979 = dma.vmem_to_hbm [thread:$0]  (%p1174_p4), %s1538_s16, 12288, %s1536_s23, %s1546_s12, %s1117_s6, %s1117_s6, %s1118_s7  }
 0x14a PF: > { %p985_p0 = scmp.ge.s32.totalorder %s1113_s14, 2  ;;  %s850_s8 = sand.u32 1, %s1093_s9  }
 0x14b   : > { %s851_s15 = scalar_lea.sflag [#allocation3], %s850_s8 }
 0x14c   : > { %p982_p1 = pnand %p985_p0, %p1181_p8 }
 0x14e   : > { %p983_p2 = pneg %p982_p1 }
 0x150   : > { %1088 = dma.done.wait (%p983_p2), %s851_s15, 12288  }
 0x151   : > { %1090 = vsyncadd (%p983_p2), %s851_s15, 4294955008  ;;  %s15_s14 = sadd.s32 1, %s1113_s14   ;;  %s1596_s9 = smov %s1097_s10 }
 0x152   : > { %p12_p3 = scmp.ge.s32.totalorder %s15_s14, 4   ;;  %s1597_s10 = smov %s1101_s11 }
 0x153   : > { %s1598_s11 = smov %s1187_s22  ;;  %s1599_s12 = smov %s1109_s13 }
 0x154   : > { %s1600_s13 = smov %s1602_s17  ;;  %14 = sbr.rel (!%p12_p3) target bundleno = 4 (0x4), region = 63 }
 0x159   :  { %856 = vsyncpa [#allocation3], 1 }
 0x15a   :  { %858 = vsyncpa [#allocation3 + $0x1], 1 }

</bundles_post_ra>
